<compile_context>
chip_gen: v5e
topology: v5e:2x2
jax: 0.10.0
libtpu: 0.0.40
codegen_flags: <defaults>
</compile_context>

<pallas_src>
from functools import partial

import jax
import jax.numpy as jnp
from jax.experimental import pallas as pl
from jax.experimental.pallas import tpu as pltpu

_FOLD_DEPTH = 256              # fold taps when K*C_in fits one MXU contraction (v6e/v7x depth)
_VMEM_LIMIT = 64 * 1024 * 1024
_BN_LANE_TILE = 2048           # lane tile for the BN pass (multiple of 128)


def _conv_kernel_folded(x_ref, w_ref, y_ref, sum_ref, sumsq_ref, xs_ref, *, copies, c_in):
    """Temporal conv with taps folded into one contraction + per-batch BN partials.

    x_ref:      (1, C_in, L_src) bf16   flattened input (unpadded when stride==1)
    w_ref:      (C_out, K*C_in)  bf16   conv weight, tap-major / channel-minor contraction
    y_ref:      (1, C_out, L)    bf16   conv output (pre-BN), L = T_out*V on lanes
    sum_ref:    (1, C_out, 1)    f32    per-batch per-channel sum      (from f32 acc)
    sumsq_ref:  (1, C_out, 1)    f32    per-batch per-channel sum(x^2) (from f32 acc)
    xs_ref:     (K*C_in, L)      bf16   VMEM scratch: stacked, halo-clipped tap slices
    """
    # Zeros supply the temporal zero-padding halo (no HBM pad in the wrapper).
    xs_ref[...] = jnp.zeros_like(xs_ref)
    for row, dst_lo, src_lo, ln in copies:                       # static, unrolled
        xs_ref[row:row + c_in, dst_lo:dst_lo + ln] = x_ref[0, :, src_lo:src_lo + ln]
    acc = jnp.dot(w_ref[...], xs_ref[...], preferred_element_type=jnp.float32)
    y_ref[0] = acc.astype(y_ref.dtype)                           # lane-dense bf16 store
    # BN partial stats from the f32 accumulator, before the bf16 downcast (XLU-slot reduces).
    sum_ref[0] = jnp.sum(acc, axis=1, keepdims=True)
    # TODO(synk): at very large (C_out, L) chunk the acc*acc temp (falls out of L-tiling).
    sumsq_ref[0] = jnp.sum(acc * acc, axis=1, keepdims=True)


def _conv_kernel_taps(x_ref, w_ref, y_ref, sum_ref, sumsq_ref, *, tap_offsets, L):
    """Fallback: per-tap contraction (used when K*C_in exceeds the MXU depth)."""
    acc = None
    for k, off in enumerate(tap_offsets):                        # static, unrolled
        xk = x_ref[0, :, off:off + L]                            # contiguous lane slice
        part = jnp.dot(w_ref[k], xk, preferred_element_type=jnp.float32)
        acc = part if acc is None else acc + part
    y_ref[0] = acc.astype(y_ref.dtype)
    sum_ref[0] = jnp.sum(acc, axis=1, keepdims=True)
    sumsq_ref[0] = jnp.sum(acc * acc, axis=1, keepdims=True)


def _bn_kernel(y_ref, scale_ref, shift_ref, o_ref):
    """Apply the (already reduced) batch-norm affine transform on one (C_out, TL) tile."""
    o_ref[0] = (y_ref[0].astype(jnp.float32) * scale_ref[0] + shift_ref[0]).astype(o_ref.dtype)


@partial(jax.jit, static_argnames=("stride", "dilation", "eps"))
def temporal_conv_forward(x_nchw, weight, bias, gamma, beta,
                          *, stride=1, dilation=1, eps=1e-5):
    """Forward pass equivalent to TemporalConv(x) in training mode.

    x_nchw: (N, C_in, T, V)       float32
    weight: (C_out, C_in, K, 1)   Conv2d weight (OIHW)
    bias:   (C_out,)              unused: cancels exactly under training-mode BN
    gamma, beta: (C_out,)         BatchNorm2d affine params
    returns: (N, C_out, T_out, V) float32
    """
    del bias  # conv bias only shifts the batch mean -> cancels in the normalized output

    N, C_in, T, V = x_nchw.shape
    C_out, _, K, _ = weight.shape
    pad = (K + (K - 1) * (dilation - 1) - 1) // 2
    T_pad = T + 2 * pad
    T_out = (T_pad - dilation * (K - 1) - 1) // stride + 1
    L = T_out * V
    fold = (K * C_in) <= _FOLD_DEPTH

    # bf16 storage: the MXU truncates to bf16 under DEFAULT precision anyway.
    x = x_nchw.astype(jnp.bfloat16)

    tap_offsets = None
    copies = None
    if stride == 1 and fold:
        # No HBM pad: the halo is materialized in VMEM inside the kernel.
        x_flat = x.reshape(N, C_in, T * V)                       # free (metadata) reshape
        cps = []
        for k in range(K):
            p0 = k * dilation * V                                # padded-lane start of tap k
            lo = max(p0, pad * V)
            hi = min(p0 + L, (pad + T) * V)
            if hi > lo:
                cps.append((k * C_in, lo - p0, lo - pad * V, hi - lo))
        copies = tuple(cps)
    else:
        # Pad in HBM (and phase-major relayout for stride>1) so taps are contiguous slices.
        xp = jnp.pad(x, ((0, 0), (0, 0), (pad, pad), (0, 0)))
        if stride == 1:
            x_flat = xp.reshape(N, C_in, T_pad * V)
            tap_offsets = tuple(k * dilation * V for k in range(K))
        else:
            T_ph = -(-T_pad // stride)
            xp = jnp.pad(xp, ((0, 0), (0, 0), (0, T_ph * stride - T_pad), (0, 0)))
            xp = xp.reshape(N, C_in, T_ph, stride, V)
            xp = jnp.transpose(xp, (0, 1, 3, 2, 4))              # (N, C_in, s, T_ph, V)
            x_flat = xp.reshape(N, C_in, stride * T_ph * V)
            tap_offsets = tuple(
                ((k * dilation) % stride) * T_ph * V + ((k * dilation) // stride) * V
                for k in range(K))
        if fold:
            copies = tuple((k * C_in, 0, off, L) for k, off in enumerate(tap_offsets))
    L_src = x_flat.shape[-1]

    conv_cost = pl.CostEstimate(
        flops=2 * N * C_out * C_in * K * L,
        transcendentals=0,
        bytes_accessed=(N * C_in * L_src * 2 + C_out * C_in * K * 2
                        + N * C_out * L * 2 + 2 * N * C_out * 4),
    )

    if fold:
        # (C_out, C_in, K) -> (C_out, K, C_in) -> (C_out, K*C_in): tap-major contraction.
        w_arg = jnp.transpose(weight[..., 0], (0, 2, 1)).reshape(C_out, K * C_in)
        w_arg = w_arg.astype(jnp.bfloat16)
        kernel = partial(_conv_kernel_folded, copies=copies, c_in=C_in)
        in_specs = [
            pl.BlockSpec((1, C_in, L_src), lambda n: (n, 0, 0)),
            pl.BlockSpec((C_out, K * C_in), lambda n: (0, 0)),
        ]
        scratch = [pltpu.VMEM((K * C_in, L), jnp.bfloat16)]
    else:
        w_arg = jnp.transpose(weight[..., 0], (2, 0, 1)).astype(jnp.bfloat16)  # (K, C_out, C_in)
        kernel = partial(_conv_kernel_taps, tap_offsets=tap_offsets, L=L)
        in_specs = [
            pl.BlockSpec((1, C_in, L_src), lambda n: (n, 0, 0)),
            pl.BlockSpec((K, C_out, C_in), lambda n: (0, 0, 0)),
        ]
        scratch = []

    conv = pl.pallas_call(
        kernel,
        grid=(N,),
        in_specs=in_specs,
        out_specs=[
            pl.BlockSpec((1, C_out, L), lambda n: (n, 0, 0)),
            pl.BlockSpec((1, C_out, 1), lambda n: (n, 0, 0)),
            pl.BlockSpec((1, C_out, 1), lambda n: (n, 0, 0)),
        ],
        out_shape=[
            jax.ShapeDtypeStruct((N, C_out, L), jnp.bfloat16),   # bf16 activation storage
            jax.ShapeDtypeStruct((N, C_out, 1), jnp.float32),
            jax.ShapeDtypeStruct((N, C_out, 1), jnp.float32),
        ],
        scratch_shapes=scratch,
        compiler_params=pltpu.CompilerParams(
            dimension_semantics=("parallel",),
            vmem_limit_bytes=_VMEM_LIMIT),
        cost_estimate=conv_cost,
    )
    y, bsum, bsumsq = conv(x_flat, w_arg)

    # Tiny per-channel scalar math (glue): fold batch mean/var/gamma/beta into scale+shift.
    count = N * T_out * V
    mean = jnp.sum(bsum[:, :, 0], axis=0) / count
    var = jnp.sum(bsumsq[:, :, 0], axis=0) / count - mean * mean     # biased (training BN)
    var = jnp.maximum(var, 0.0)                                      # guard E[x^2]-E[x]^2
    scale = gamma.astype(jnp.float32) * jax.lax.rsqrt(var + eps)
    shift = beta.astype(jnp.float32) - mean * scale
    scale3 = scale.reshape(1, C_out, 1)
    shift3 = shift.reshape(1, C_out, 1)

    TL = L if L <= _BN_LANE_TILE else _BN_LANE_TILE
    n_lt = pl.cdiv(L, TL)
    bn_cost = pl.CostEstimate(
        flops=2 * N * C_out * L,
        transcendentals=0,
        bytes_accessed=N * C_out * L * (2 + 4) + 2 * C_out * 4,
    )
    bn = pl.pallas_call(
        _bn_kernel,
        grid=(N, n_lt),
        in_specs=[
            pl.BlockSpec((1, C_out, TL), lambda n, l: (n, 0, l)),
            pl.BlockSpec((1, C_out, 1), lambda n, l: (0, 0, 0)),
            pl.BlockSpec((1, C_out, 1), lambda n, l: (0, 0, 0)),
        ],
        out_specs=pl.BlockSpec((1, C_out, TL), lambda n, l: (n, 0, l)),
        out_shape=jax.ShapeDtypeStruct((N, C_out, L), jnp.float32),
        compiler_params=pltpu.CompilerParams(
            dimension_semantics=("parallel", "parallel"),
            vmem_limit_bytes=_VMEM_LIMIT),
        cost_estimate=bn_cost,
    )
    out = bn(y, scale3, shift3)

    return out.reshape(N, C_out, T_out, V)        # free reshape: already NCHW order


if __name__ == "__main__":
    key = jax.random.PRNGKey(0)
    k1, k2, k3, k4, k5 = jax.random.split(key, 5)

    # small shapes consistent with the module: x is (N, C_in, T, V)
    N, C_in, C_out, T, V = 2, 4, 8, 16, 16
    K, stride, dilation = 3, 1, 1
    pad = (K + (K - 1) * (dilation - 1) - 1) // 2

    x = jax.random.normal(k1, (N, C_in, T, V), jnp.float32)
    weight = 0.1 * jax.random.normal(k2, (C_out, C_in, K, 1), jnp.float32)
    bias = 0.1 * jax.random.normal(k3, (C_out,), jnp.float32)
    gamma = 1.0 + 0.1 * jax.random.normal(k4, (C_out,), jnp.float32)
    beta = 0.1 * jax.random.normal(k5, (C_out,), jnp.float32)

    # Round matmul operands to bf16-representable values so the kernel's bf16 storage /
    # bf16-MXU, f32-accumulate path is comparable to the fp32 reference below. The
    # remaining difference is the bf16 storage of the intermediate conv output.
    x = x.astype(jnp.bfloat16).astype(jnp.float32)
    weight = weight.astype(jnp.bfloat16).astype(jnp.float32)

    out = temporal_conv_forward(x, weight, bias, gamma, beta,
                                stride=stride, dilation=dilation)
    out = jax.block_until_ready(out)

    # pure-JAX reference (Conv2d + training-mode BatchNorm2d)
    ref_conv = jax.lax.conv_general_dilated(
        x, weight,
        window_strides=(stride, 1),
        padding=((pad, pad), (0, 0)),
        rhs_dilation=(dilation, 1),
        dimension_numbers=("NCHW", "OIHW", "NCHW"),
        precision=jax.lax.Precision.HIGHEST,
    ) + bias.reshape(1, C_out, 1, 1)
    mean = ref_conv.mean(axis=(0, 2, 3), keepdims=True)
    var = ref_conv.var(axis=(0, 2, 3), keepdims=True)           # biased
    ref = ((ref_conv - mean) / jnp.sqrt(var + 1e-5)
           * gamma.reshape(1, -1, 1, 1) + beta.reshape(1, -1, 1, 1))

    assert out.shape == ref.shape, (out.shape, ref.shape)
    # Tolerance reflects bf16 storage of the intermediate conv activation (~2^-9 relative).
    assert jnp.allclose(out, ref, atol=2e-2, rtol=5e-3), float(jnp.abs(out - ref).max())
    print("KERNEL_OK")
</pallas_src>

<mosaic_0001>
module attributes {stable_mosaic.version = 11 : i64} {
  func.func @_conv_kernel_folded(%arg0: i32, %arg1: memref<1x4x256xbf16, #tpu.memory_space<vmem>>, %arg2: memref<8x12xbf16, #tpu.memory_space<vmem>>, %arg3: memref<1x8x256xbf16, #tpu.memory_space<vmem>>, %arg4: memref<1x8x1xf32, #tpu.memory_space<vmem>>, %arg5: memref<1x8x1xf32, #tpu.memory_space<vmem>>, %arg6: memref<12x256xbf16, #tpu.memory_space<vmem>>) attributes {dimension_semantics = [#tpu.dimension_semantics<parallel>], iteration_bounds = array<i64: 2>, scalar_prefetch = 0 : i64, scratch_operands = 1 : i64, tpu.core_type = #tpu.core_type<tc>, window_params = [{transform_indices = @transform_0, window_bounds = array<i64: 1, 4, 256>}, {pipeline_mode = #tpu.pipeline_mode<synchronous>, transform_indices = @transform_1, window_bounds = array<i64: 8, 12>}, {transform_indices = @transform_2, window_bounds = array<i64: 1, 8, 256>}, {transform_indices = @transform_3, window_bounds = array<i64: 1, 8, 1>}, {transform_indices = @transform_4, window_bounds = array<i64: 1, 8, 1>}]} {
    %cst = arith.constant 0.000000e+00 : bf16
    %0 = vector.broadcast %cst : bf16 to vector<12x256xbf16>
    %c0 = arith.constant 0 : index
    %c0_0 = arith.constant 0 : index
    %1 = vector.load %arg6[%c0, %c0_0] : memref<12x256xbf16, #tpu.memory_space<vmem>>, vector<12x256xbf16>
    tpu.vector_store %arg6[%c0, %c0_0], %0 {strides = array<i32>} : memref<12x256xbf16, #tpu.memory_space<vmem>>, vector<12x256xbf16>,
    %c0_1 = arith.constant 0 : index
    %c0_2 = arith.constant 0 : index
    %c0_3 = arith.constant 0 : index
    %2 = vector.load %arg1[%c0_1, %c0_2, %c0_3] : memref<1x4x256xbf16, #tpu.memory_space<vmem>>, vector<1x4x240xbf16>
    %3 = vector.shape_cast %2 : vector<1x4x240xbf16> to vector<4x240xbf16>
    %c0_4 = arith.constant 0 : index
    %c16 = arith.constant 16 : index
    %4 = vector.load %arg6[%c0_4, %c16] : memref<12x256xbf16, #tpu.memory_space<vmem>>, vector<4x240xbf16>
    tpu.vector_store %arg6[%c0_4, %c16], %3 {strides = array<i32>} : memref<12x256xbf16, #tpu.memory_space<vmem>>, vector<4x240xbf16>,
    %c0_5 = arith.constant 0 : index
    %c0_6 = arith.constant 0 : index
    %c0_7 = arith.constant 0 : index
    %5 = vector.load %arg1[%c0_5, %c0_6, %c0_7] : memref<1x4x256xbf16, #tpu.memory_space<vmem>>, vector<1x4x256xbf16>
    %6 = vector.shape_cast %5 : vector<1x4x256xbf16> to vector<4x256xbf16>
    %c4 = arith.constant 4 : index
    %c0_8 = arith.constant 0 : index
    %7 = vector.load %arg6[%c4, %c0_8] : memref<12x256xbf16, #tpu.memory_space<vmem>>, vector<4x256xbf16>
    tpu.vector_store %arg6[%c4, %c0_8], %6 {strides = array<i32>} : memref<12x256xbf16, #tpu.memory_space<vmem>>, vector<4x256xbf16>,
    %c0_9 = arith.constant 0 : index
    %c0_10 = arith.constant 0 : index
    %c16_11 = arith.constant 16 : index
    %8 = vector.load %arg1[%c0_9, %c0_10, %c16_11] : memref<1x4x256xbf16, #tpu.memory_space<vmem>>, vector<1x4x240xbf16>
    %9 = vector.shape_cast %8 : vector<1x4x240xbf16> to vector<4x240xbf16>
    %c8 = arith.constant 8 : index
    %c0_12 = arith.constant 0 : index
    %10 = vector.load %arg6[%c8, %c0_12] : memref<12x256xbf16, #tpu.memory_space<vmem>>, vector<4x240xbf16>
    tpu.vector_store %arg6[%c8, %c0_12], %9 {strides = array<i32>} : memref<12x256xbf16, #tpu.memory_space<vmem>>, vector<4x240xbf16>,
    %c0_13 = arith.constant 0 : index
    %c0_14 = arith.constant 0 : index
    %11 = vector.load %arg2[%c0_13, %c0_14] : memref<8x12xbf16, #tpu.memory_space<vmem>>, vector<8x12xbf16>
    %c0_15 = arith.constant 0 : index
    %c0_16 = arith.constant 0 : index
    %12 = vector.load %arg6[%c0_15, %c0_16] : memref<12x256xbf16, #tpu.memory_space<vmem>>, vector<12x256xbf16>
    %cst_17 = arith.constant dense<0.000000e+00> : vector<8x256xf32>
    %13 = tpu.matmul %11, %12, %cst_17 {dimension_numbers = #tpu.dot_dimension_numbers<[1], [0], [0], [1], [0, 0, 1, 1], [], []>} : vector<8x12xbf16>, vector<12x256xbf16>, vector<8x256xf32> -> vector<8x256xf32>
    %14 = arith.truncf %13 : vector<8x256xf32> to vector<8x256xbf16>
    %c0_18 = arith.constant 0 : index
    %c0_19 = arith.constant 0 : index
    %c0_20 = arith.constant 0 : index
    %15 = vector.load %arg3[%c0_18, %c0_19, %c0_20] : memref<1x8x256xbf16, #tpu.memory_space<vmem>>, vector<1x8x256xbf16>
    %16 = vector.shape_cast %15 : vector<1x8x256xbf16> to vector<8x256xbf16>
    %17 = vector.shape_cast %14 : vector<8x256xbf16> to vector<1x8x256xbf16>
    tpu.vector_store %arg3[%c0_18, %c0_19, %c0_20], %17 {strides = array<i32>} : memref<1x8x256xbf16, #tpu.memory_space<vmem>>, vector<1x8x256xbf16>,
    %cst_21 = arith.constant dense<0.000000e+00> : vector<8xf32>
    %18 = vector.multi_reduction <add>, %13, %cst_21 [1] : vector<8x256xf32> to vector<8xf32>
    %19 = vector.shape_cast %18 : vector<8xf32> to vector<8x1xf32>
    %c0_22 = arith.constant 0 : index
    %c0_23 = arith.constant 0 : index
    %c0_24 = arith.constant 0 : index
    %20 = vector.load %arg4[%c0_22, %c0_23, %c0_24] : memref<1x8x1xf32, #tpu.memory_space<vmem>>, vector<1x8x1xf32>
    %21 = vector.shape_cast %20 : vector<1x8x1xf32> to vector<8x1xf32>
    %22 = vector.shape_cast %19 : vector<8x1xf32> to vector<1x8x1xf32>
    tpu.vector_store %arg4[%c0_22, %c0_23, %c0_24], %22 {strides = array<i32>} : memref<1x8x1xf32, #tpu.memory_space<vmem>>, vector<1x8x1xf32>,
    %23 = arith.mulf %13, %13 : vector<8x256xf32>
    %cst_25 = arith.constant dense<0.000000e+00> : vector<8xf32>
    %24 = vector.multi_reduction <add>, %23, %cst_25 [1] : vector<8x256xf32> to vector<8xf32>
    %25 = vector.shape_cast %24 : vector<8xf32> to vector<8x1xf32>
    %c0_26 = arith.constant 0 : index
    %c0_27 = arith.constant 0 : index
    %c0_28 = arith.constant 0 : index
    %26 = vector.load %arg5[%c0_26, %c0_27, %c0_28] : memref<1x8x1xf32, #tpu.memory_space<vmem>>, vector<1x8x1xf32>
    %27 = vector.shape_cast %26 : vector<1x8x1xf32> to vector<8x1xf32>
    %28 = vector.shape_cast %25 : vector<8x1xf32> to vector<1x8x1xf32>
    tpu.vector_store %arg5[%c0_26, %c0_27, %c0_28], %28 {strides = array<i32>} : memref<1x8x1xf32, #tpu.memory_space<vmem>>, vector<1x8x1xf32>,
    return
  }
  func.func @transform_0(%arg0: i32) -> (i32, i32, i32) {
    %c0_i32 = arith.constant 0 : i32
    %c0_i32_0 = arith.constant 0 : i32
    %c0_i32_1 = arith.constant 0 : i32
    return %arg0, %c0_i32, %c0_i32_0 : i32, i32, i32
  }
  func.func @transform_1(%arg0: i32) -> (i32, i32) {
    %c0_i32 = arith.constant 0 : i32
    %c0_i32_0 = arith.constant 0 : i32
    %c0_i32_1 = arith.constant 0 : i32
    return %c0_i32, %c0_i32_0 : i32, i32
  }
  func.func @transform_2(%arg0: i32) -> (i32, i32, i32) {
    %c0_i32 = arith.constant 0 : i32
    %c0_i32_0 = arith.constant 0 : i32
    %c0_i32_1 = arith.constant 0 : i32
    return %arg0, %c0_i32, %c0_i32_0 : i32, i32, i32
  }
  func.func @transform_3(%arg0: i32) -> (i32, i32, i32) {
    %c0_i32 = arith.constant 0 : i32
    %c0_i32_0 = arith.constant 0 : i32
    %c0_i32_1 = arith.constant 0 : i32
    return %arg0, %c0_i32, %c0_i32_0 : i32, i32, i32
  }
  func.func @transform_4(%arg0: i32) -> (i32, i32, i32) {
    %c0_i32 = arith.constant 0 : i32
    %c0_i32_0 = arith.constant 0 : i32
    %c0_i32_1 = arith.constant 0 : i32
    return %arg0, %c0_i32, %c0_i32_0 : i32, i32, i32
  }
}

module attributes {stable_mosaic.version = 11 : i64} {
  func.func @_bn_kernel(%arg0: i32, %arg1: i32, %arg2: memref<1x8x256xbf16, #tpu.memory_space<vmem>>, %arg3: memref<1x8x1xf32, #tpu.memory_space<vmem>>, %arg4: memref<1x8x1xf32, #tpu.memory_space<vmem>>, %arg5: memref<1x8x256xf32, #tpu.memory_space<vmem>>) attributes {dimension_semantics = [#tpu.dimension_semantics<parallel>, #tpu.dimension_semantics<parallel>], iteration_bounds = array<i64: 2, 1>, scalar_prefetch = 0 : i64, scratch_operands = 0 : i64, tpu.core_type = #tpu.core_type<tc>, window_params = [{transform_indices = @transform_0, window_bounds = array<i64: 1, 8, 256>}, {pipeline_mode = #tpu.pipeline_mode<synchronous>, transform_indices = @transform_1, window_bounds = array<i64: 1, 8, 1>}, {pipeline_mode = #tpu.pipeline_mode<synchronous>, transform_indices = @transform_2, window_bounds = array<i64: 1, 8, 1>}, {transform_indices = @transform_3, window_bounds = array<i64: 1, 8, 256>}]} {
    %c0 = arith.constant 0 : index
    %c0_0 = arith.constant 0 : index
    %c0_1 = arith.constant 0 : index
    %0 = vector.load %arg2[%c0, %c0_0, %c0_1] : memref<1x8x256xbf16, #tpu.memory_space<vmem>>, vector<1x8x256xbf16>
    %1 = vector.shape_cast %0 : vector<1x8x256xbf16> to vector<8x256xbf16>
    %2 = arith.extf %1 : vector<8x256xbf16> to vector<8x256xf32>
    %c0_2 = arith.constant 0 : index
    %c0_3 = arith.constant 0 : index
    %c0_4 = arith.constant 0 : index
    %3 = vector.load %arg3[%c0_2, %c0_3, %c0_4] : memref<1x8x1xf32, #tpu.memory_space<vmem>>, vector<1x8x1xf32>
    %4 = vector.shape_cast %3 : vector<1x8x1xf32> to vector<8x1xf32>
    %5 = vector.broadcast %4 : vector<8x1xf32> to vector<8x256xf32>
    %6 = arith.mulf %2, %5 : vector<8x256xf32>
    %c0_5 = arith.constant 0 : index
    %c0_6 = arith.constant 0 : index
    %c0_7 = arith.constant 0 : index
    %7 = vector.load %arg4[%c0_5, %c0_6, %c0_7] : memref<1x8x1xf32, #tpu.memory_space<vmem>>, vector<1x8x1xf32>
    %8 = vector.shape_cast %7 : vector<1x8x1xf32> to vector<8x1xf32>
    %9 = vector.broadcast %8 : vector<8x1xf32> to vector<8x256xf32>
    %10 = arith.addf %6, %9 : vector<8x256xf32>
    %c0_8 = arith.constant 0 : index
    %c0_9 = arith.constant 0 : index
    %c0_10 = arith.constant 0 : index
    %11 = vector.load %arg5[%c0_8, %c0_9, %c0_10] : memref<1x8x256xf32, #tpu.memory_space<vmem>>, vector<1x8x256xf32>
    %12 = vector.shape_cast %11 : vector<1x8x256xf32> to vector<8x256xf32>
    %13 = vector.shape_cast %10 : vector<8x256xf32> to vector<1x8x256xf32>
    tpu.vector_store %arg5[%c0_8, %c0_9, %c0_10], %13 {strides = array<i32>} : memref<1x8x256xf32, #tpu.memory_space<vmem>>, vector<1x8x256xf32>,
    return
  }
  func.func @transform_0(%arg0: i32, %arg1: i32) -> (i32, i32, i32) {
    %c0_i32 = arith.constant 0 : i32
    %c0_i32_0 = arith.constant 0 : i32
    return %arg0, %c0_i32, %arg1 : i32, i32, i32
  }
  func.func @transform_1(%arg0: i32, %arg1: i32) -> (i32, i32, i32) {
    %c0_i32 = arith.constant 0 : i32
    %c0_i32_0 = arith.constant 0 : i32
    %c0_i32_1 = arith.constant 0 : i32
    %c0_i32_2 = arith.constant 0 : i32
    return %c0_i32, %c0_i32_0, %c0_i32_1 : i32, i32, i32
  }
  func.func @transform_2(%arg0: i32, %arg1: i32) -> (i32, i32, i32) {
    %c0_i32 = arith.constant 0 : i32
    %c0_i32_0 = arith.constant 0 : i32
    %c0_i32_1 = arith.constant 0 : i32
    %c0_i32_2 = arith.constant 0 : i32
    return %c0_i32, %c0_i32_0, %c0_i32_1 : i32, i32, i32
  }
  func.func @transform_3(%arg0: i32, %arg1: i32) -> (i32, i32, i32) {
    %c0_i32 = arith.constant 0 : i32
    %c0_i32_0 = arith.constant 0 : i32
    return %arg0, %c0_i32, %arg1 : i32, i32, i32
  }
}

</mosaic_0001>

<bundles_post_ra>
// kernel: temporal_conv_forward.3
= control target key start
LH: loop header
LB: loop body
LE: loop exit
PB: predicated region body
PF: predicated region fallthrough
CT: control target
= control target key end

     0   :  { %s402_s12 = smov 0   ;;  %s404_s13 = smov 0   ;;  %s441_s0 = inlined_call_operand.vmem [shape: bf16[2,8,256], index: 0, kind: input, shape index: {}]   ;;  %s442_s1 = inlined_call_operand.vmem [shape: f32[1,8,1], index: 1, kind: input, shape index: {}]   ;;  %s443_s2 = inlined_call_operand.vmem [shape: f32[1,8,1], index: 2, kind: input, shape index: {}]   ;;  %s444_s3 = inlined_call_operand.vmem [shape: f32[2,8,256], index: 3, kind: output, shape index: {}]  }
   0x1   :  { %s406_s14 = smov 0  }
   0x2 LB: > { %s25_s15 = sadd.s32 1, %s375_s13  ;;  %p322_p0 = scmp.ge.s32.totalorder %s379_s14, 1  ;;  %s379_s14 = sphi %s406_s14, %s13_s14   ;;  %s375_s13 = sphi %s404_s13, %s446_s13   ;;  %s371_s12 = sphi %s402_s12, %s445_s12  }
   0x3   : > { %p27_p1 = scmp.ge.s32.totalorder %s25_s15, 2  ;;  %p158_p2 = scmp.lt.s32.totalorder %s379_s14, 3 }
   0x5   : > { %s448_s15 = smov (%p27_p1, %s25_s15), 0  ;;  %p159_p3 = pnand %p322_p0, %p158_p2 }
   0x6   : > { %p191_p4 = scmp.lt.s32.totalorder (!%p159_p3), %s371_s12, 1 }
   0x7   : > { %162 = sbr.rel (%p159_p3) target bundleno = 141 (0x8d), region = 32 }
   0xc   : > { %v213_v0 = vld [vmem:[%s442_s1] sm:$0xff]  ;;  %v381_v1 = vmov 0   ;;  %s450_s12 = smov (!%p191_p4, %s371_s12), 1 }
   0xd   : > { %356 = vset.pattern.permute.xlu0 %v381_v1  ;;  %v221_v2 = vld [vmem:[%s443_s2] sm:$0xff]  ;;  %s329_s20 = sshll.u32 %s450_s12, 3  ;;  %s330_s24 = sshll.u32 %s450_s12, 4 }
   0xe   : > { %216 = vperm.xlu0 %356, %v213_v0   ;;  %s198_s23 = scalar_lea.vmem %s441_s0, %s329_s20  ;;  %s208_s27 = scalar_lea.vmem %s444_s3, %s330_s24 }
   0xf   : > { %v210_v4 = vld [vmem:[%s198_s23] sm:$0xff] }
  0x10   : > { %v211_v5 = vunpack.c.l.bf16 %v210_v4  ;;  %v212_v6 = vunpack.c.h.bf16 %v210_v4 }
  0x16   : > { %224 = vperm.xlu0 %356, %v221_v2  }
  0x80   : > { %v217_v3 = vpop.permute.xlu0 %216 }
  0x81   : > { %v219_v7 = vmul.f32 %v217_v3, %v211_v5  ;;  %v220_v8 = vmul.f32 %v217_v3, %v212_v6 }
  0x88   : > { %v225_v9 = vpop.permute.xlu0 %224 }
  0x89   : > { %v227_v10 = vadd.f32 %v225_v9, %v219_v7  ;;  %v228_v11 = vadd.f32 %v225_v9, %v220_v8 }
  0x8b   : > { %229 = vst [vmem:[%s208_s27] sm:$0xff] %v227_v10 }
  0x8c   : > { %230 = vst [vmem:[%s208_s27 + $0x8] sm:$0xff] %v228_v11 }
  0x8d PF: > { %s13_s14 = sadd.s32 1, %s379_s14   ;;  %s445_s12 = smov %s375_s13 }
  0x8e   : > { %p10_p5 = scmp.ge.s32.totalorder %s13_s14, 4   ;;  %s446_s13 = smov %s448_s15 }
  0x90   :  { %12 = sbr.rel (!%p10_p5) target bundleno = 2 (0x2), region = 62 }

// kernel: temporal_conv_forward.2
= control target key start
LH: loop header
LB: loop body
LE: loop exit
PB: predicated region body
PF: predicated region fallthrough
CT: control target
= control target key end

     0   :  { %s511_s15 = smov 0   ;;  %s541_s0 = inlined_call_operand.vmem [shape: bf16[2,4,256], index: 0, kind: input, shape index: {}]   ;;  %s542_s1 = inlined_call_operand.vmem [shape: bf16[8,12], index: 1, kind: input, shape index: {}]   ;;  %s543_s2 = inlined_call_operand.vmem [shape: bf16[2,8,256], index: 2, kind: output, shape index: {0}]   ;;  %s544_s3 = inlined_call_operand.vmem [shape: f32[2,8,1], index: 3, kind: output, shape index: {1}]   ;;  %s545_s4 = inlined_call_operand.vmem [shape: f32[2,8,1], index: 4, kind: output, shape index: {2}]  }
   0x1 LB: > { %s437_s16 = sadd.s32 4294967295, %s481_s15   ;;  %p441_p0 = scmp.ge.s32.totalorder %s481_s15, 1  ;;  %s481_s15 = sphi %s511_s15, %s15_s15  }
   0x2   : > { %p167_p1 = scmp.lt.s32.totalorder %s481_s15, 3 }
   0x4   : > { %p168_p2 = pnand %p441_p0, %p167_p1 }
   0x5   : > { %p201_p3 = scmp.lt.s32.totalorder (!%p168_p2), %s437_s16, 1  ;;  %s484_s21 = smov (!%p168_p2), 16  }
   0x6   : > { %171 = sbr.rel (%p168_p2) target bundleno = 424 (0x1a8), region = 28  ;;  %s485_s22 = smov (!%p168_p2), 112  }
   0xb   : > { %v483_v0 = vmov 0   ;;  %s547_s16 = smov (!%p201_p3, %s437_s16), 1  ;;  %vm233_vm0 = vcmask 1041536   ;;  %vm234_vm1 = vcmask 1045508   ;;  %vm230_vm2 = vcmask 130048  }
   0xc   : > { %220 = vst [vmem:[#allocation2] sm:$0xff] %v483_v0  ;;  %s460_s17 = sshll.u32 %s547_s16, 2  ;;  %vm235_vm3 = vmor %vm234_vm1, %vm233_vm0  ;;  %vm255_vm4 = vcmask 1041408   ;;  %vm256_vm5 = vcmask 914436   ;;  %vm252_vm6 = vcmask 916480   ;;  %vm274_vm8 = vcmask 1045504  }
   0xd   : > { %221 = vst [vmem:[#allocation2 + $0x8] sm:$0x33] %v483_v0  ;;  %s205_s20 = scalar_lea.vmem %s541_s0, %s460_s17  ;;  %vm257_vm7 = vmor %vm256_vm5, %vm255_vm4  ;;  %v259_v21 = vld [vmem:[%s542_s1] sm:$0xf]  ;;  %vm270_vm9 = vcmask 97280   ;;  %s461_s25 = sshll.u32 %s547_s16, 3 }
   0xe   : > { %v222_v1 = vld [vmem:[%s205_s20] sm:$0xf]  ;;  %s210_s28 = scalar_lea.vmem %s543_s2, %s461_s25  ;;  %s214_s5 = scalar_lea.vmem %s544_s3, %s461_s25  ;;  %vm312_vm10 = vcmask 7168  }
   0xf   : > { %224 = vst [vmem:[#allocation1] ss:$2 sm:$0xff] %v222_v1  ;;  %v237_v2 = vld [vmem:[%s205_s20] sm:$0xf]  ;;  %s218_s8 = scalar_lea.vmem %s545_s4, %s461_s25 }
  0x10   : > { %v244_v4 = vld [vmem:[%s205_s20] sm:$0xf] }
  0x16   : > { %v225_v3 = vld.sshfl [vmem:[#allocation1] sm:$0xff pattern:$0x75643120] }
  0x17   : > { %227 = vrot.lane.b32.xlu0 %v225_v3, %s484_s21  ;;  %240 = vst [vmem:[#allocation1 + $0x1] ss:$2 sm:$0xff] %v237_v2 }
  0x1e   : > { %v241_v5 = vld.sshfl [vmem:[#allocation1] sm:$0xff pattern:$0x75643120] }
  0x1f   : > { %246 = vst [vmem:[#allocation1] ss:$2 sm:$0xff] %v244_v4 }
  0x20   : > { %243 = vst [vmem:[#allocation2] sm:$0xcc] %v241_v5 }
  0x26   : > { %v247_v6 = vld.sshfl [vmem:[#allocation1] sm:$0xff pattern:$0x75643120] }
  0x27   : > { %249 = vrot.lane.b32.xlu0 %v247_v6, %s485_s22 }
  0x89   : > { %v228_v7 = vpop.permute.xlu0 %227 }
  0x8a   : > { %v229_v8 = vrot.slane %v228_v7, 4 }
  0x8c   : > { %v231_v9 = vsel %vm230_vm2, %v229_v8, %v228_v7 }
  0x8d   : > { %236 = vst.msk [vmem:[#allocation2] sm:$0x33] %vm235_vm3, %v231_v9 }
  0x94   : > { %v450_v13 = vld [vmem:[#allocation2] sm:$0xf]  ;;  %v462_v15 = vld [vmem:[#allocation2 + $0x4] sm:$0xf] }
  0x99   : > { %v250_v10 = vpop.permute.xlu0 %249 }
  0x9a   : > { %v251_v11 = vrot.slane %v250_v10, 4 }
  0x9c   : > { %v253_v12 = vsel %vm252_vm6, %v250_v10, %v251_v11 }
  0x9d   : > { %258 = vst.msk [vmem:[#allocation2 + $0x8] sm:$0x33] %vm257_vm7, %v253_v12 }
  0xa4   : > { %v463_v14 = vld [vmem:[#allocation2 + $0x4] sm:$0x30]  ;;  %v452_v16 = vld [vmem:[#allocation2 + $0x8] sm:$0x30] }
  0xa5   : > { %v451_v17 = vor.u32 %v463_v14, %v450_v13  ;;  %v455_v18 = vor.u32 %v462_v15, %v452_v16 }
  0xa7   : > { %v276_v19 = vsel %vm274_vm8, %v451_v17, 0  ;;  %v279_v20 = vsel %vm274_vm8, %v455_v18, 0 }
  0xa8   : > { %288 = vmatpush.bf16.msra.mxu0 %v276_v19  ;;  %301 = vmatpush.bf16.msra.mxu1 %v279_v20 }
  0xab   : > { %456 = vmatmul.msk.bf16.vlgmr.msra.gmra.mxu0 %vm270_vm9, %v259_v21  ;;  %457 = vmatmul.msk.bf16.vlgmr.msra.gmra.mxu1 %vm270_vm9, %v259_v21 }
 0x128   : > { %v290_v22 = vpop.f32.mrf.mxu0  ;;  %v303_v23 = vpop.f32.mrf.mxu1 }
 0x129   : > { %v307_v24 = vpack.c.bf16 %v303_v23, %v290_v22  ;;  %v309_v25 = vadd.f32 %v303_v23, %v290_v22  ;;  %v314_v26 = vmul.f32 %v290_v22, %v290_v22  ;;  %v315_v27 = vmul.f32 %v303_v23, %v303_v23 }
 0x12b   : > { %308 = vst [vmem:[%s210_s28] sm:$0xff] %v307_v24  ;;  %310 = vadd.xlane.f32.xlu1 %v309_v25  ;;  %v316_v30 = vadd.f32 %v315_v27, %v314_v26 }
 0x130   : > { %v292_v28 = vpop.f32.mrf.mxu0  ;;  %v305_v29 = vpop.f32.mrf.mxu1 }
 0x133   : > { %317 = vadd.xlane.f32.xlu1 %v316_v30 }
 0x19e   : > { %v311_v31 = vpop.xlane.xlu1 %310 }
 0x19f   : > { %313 = vst.msk [vmem:[%s214_s5] sm:$0xff] %vm312_vm10, %v311_v31 }
 0x1a6   : > { %v318_v32 = vpop.xlane.xlu1 %317 }
 0x1a7   : > { %319 = vst.msk [vmem:[%s218_s8] sm:$0xff] %vm312_vm10, %v318_v32 }
 0x1a8 PF: > { %s15_s15 = sadd.s32 1, %s481_s15  }
 0x1a9   : > { %p12_p4 = scmp.ge.s32.totalorder %s15_s15, 4  }
 0x1ab   :  { %14 = sbr.rel (!%p12_p4) target bundleno = 1 (0x1), region = 83 }

</bundles_post_ra>
